<compile_context>
chip_gen: v7x
topology: tpu7x:2x2x1
jax: 0.10.0
libtpu: 0.0.40
codegen_flags: <defaults>
</compile_context>

<pallas_src>
import math

import jax
import jax.numpy as jnp
from jax import lax
from jax.experimental import pallas as pl
from jax.experimental.pallas import tpu as pltpu

_MIB = 1024 * 1024
_LANE = 128


# ---------------------------------------------------------------------------
# Kernel
# ---------------------------------------------------------------------------
def _interp_kernel(wy_ref, wx_ref, x_ref, o_ref, u_ref):
    """One grid step: resize `b` image planes for one output-row tile.

    wy_ref : (TOH, H)    height weights for this output-row tile (compute dtype)
    wx_ref : (W,   OW)   width weights (compute dtype)
    x_ref  : (b*H, W)    b source planes stacked along rows
    o_ref  : (b*TOH, OW) b output tiles stacked along rows
    u_ref  : (b*TOH, W)  VMEM scratch holding the height-pass intermediate
    """
    toh, h = wy_ref.shape
    b = x_ref.shape[0] // h
    cd = wy_ref.dtype

    wy = wy_ref[...]

    # ---- Height pass: per plane, a clean 2-D MXU matmul (TOH,H)@(H,W). ------
    # No broadcasted weight copies; K = H = full source height.
    def height_one(x_slice, u_slice):
        xi = x_ref[x_slice, :].astype(cd)                       # (H, W)
        ui = jnp.dot(wy, xi, preferred_element_type=jnp.float32)
        u_ref[u_slice, :] = ui.astype(cd)

    if b <= 32:
        # Static unroll -> static slices, best scheduling visibility.
        for i in range(b):
            height_one(pl.ds(i * h, h), pl.ds(i * toh, toh))
    else:
        # Bounded code size for very large plane batches (tiny-plane inputs).
        hp = h & -h          # largest power-of-two divisor (alignment hint)
        tp = toh & -toh

        def body(i, carry):
            height_one(pl.ds(pl.multiple_of(i * h, hp), h),
                       pl.ds(pl.multiple_of(i * toh, tp), toh))
            return carry

        lax.fori_loop(0, b, body, 0)

    # ---- Width pass: one folded 2-D MXU matmul (b*TOH, W) @ (W, OW). --------
    out = jnp.dot(u_ref[...], wx_ref[...], preferred_element_type=jnp.float32)
    # Single full-block store (lane-dense when OW is a multiple of 128).
    o_ref[...] = out.astype(o_ref.dtype)


# ---------------------------------------------------------------------------
# Weights (PyTorch align_corners=False bilinear)
# ---------------------------------------------------------------------------
def _linear_weights(in_size, out_size, scale):
    """Return W (out_size, in_size) so that `out = W @ in` along that axis.

    Uses src = (dst + 0.5)/scale - 0.5 clamped at 0 with edge-clamped taps,
    matching torch F.interpolate(..., mode='bilinear') with the scale factor
    used directly (recompute_scale_factor=False, the current torch default).
    """
    dst = jnp.arange(out_size, dtype=jnp.float32)
    src = jnp.maximum((dst + 0.5) / float(scale) - 0.5, 0.0)
    i0 = jnp.clip(jnp.floor(src).astype(jnp.int32), 0, in_size - 1)
    i1 = jnp.minimum(i0 + 1, in_size - 1)
    frac = src - i0.astype(jnp.float32)
    rows = jnp.arange(out_size)
    w = jnp.zeros((out_size, in_size), jnp.float32)
    w = w.at[rows, i0].add(1.0 - frac)
    w = w.at[rows, i1].add(frac)
    return w


# ---------------------------------------------------------------------------
# Sizing / hardware helpers
# ---------------------------------------------------------------------------
def _rup(x, m):
    return ((x + m - 1) // m) * m


def _sublane(itemsize):
    # native sublane granularity: 8 (f32), 16 (bf16), 32 (int8)
    return 8 * max(1, 4 // max(1, itemsize))


def _block_vmem_bytes(b, toh, H, W, OW, x_isz, o_isz, c_isz):
    """Conservative per-grid-step VMEM footprint with (sublane,128) padding."""
    def buf(rows, cols, isz):
        return _rup(rows, _sublane(isz)) * _rup(cols, _LANE) * isz

    xb = 2 * buf(b * H, W, x_isz)          # input block, double-buffered
    ob = 2 * buf(b * toh, OW, o_isz)       # output block, double-buffered
    wyb = 2 * buf(toh, H, c_isz)           # weight blocks (grid-invariant but
    wxb = 2 * buf(W, OW, c_isz)            #   still double-buffered)
    ub = buf(b * toh, W, c_isz)            # height-pass scratch
    f32w = buf(b * toh, OW, 4)             # f32 width-matmul result
    f32h = buf(toh, W, 4)                  # per-plane f32 height-matmul result
    xcast = buf(H, W, c_isz) if x_isz != c_isz else 0
    ocast = buf(b * toh, OW, o_isz) if o_isz != 4 else 0
    return xb + ob + wyb + wxb + ub + f32w + f32h + xcast + ocast


def _vmem_capacity_bytes():
    try:
        return int(getattr(pltpu.get_tpu_info(), "vmem_capacity_bytes"))
    except Exception:
        return 64 * _MIB               # conservative (v7x-sized) fallback


def _tensorcores_per_device():
    try:
        kind = (jax.devices()[0].device_kind or "").lower()
    except Exception:
        return 1
    # v7x and the megacore parts (v4 / v5p) expose 2 TensorCores per device.
    return 2 if any(t in kind for t in ("v7", "7x", "v4", "v5p")) else 1


def _plane_align(H, OH, itemsize):
    """Smallest m so that (m*H) and (m*OH) are sublane-aligned block rows."""
    sub = _sublane(itemsize)

    def need(v):
        return sub // math.gcd(sub, v)

    a, c = need(H), need(OH)
    return a * c // math.gcd(a, c)


def _choose_plane_block(nc, b_fit, align, two_cores):
    """Pick (planes_per_step, steps, padded_plane_count) for plane-batch mode."""
    b_fit = max(1, min(b_fit, nc))
    steps = -(-nc // b_fit)
    if two_cores and nc >= 2:
        # keep both TensorCores busy: >= 4 (or nc) steps, even step count
        steps = max(steps, min(4, nc))
        if steps % 2 and steps < nc:
            steps += 1
    b = -(-nc // steps)
    if b >= nc:
        return nc, 1, nc               # single full block (block dims == array dims)
    b = max(align, (b // align) * align)
    steps = -(-nc // b)
    return b, steps, steps * b


# ---------------------------------------------------------------------------
# Wrapper
# ---------------------------------------------------------------------------
def interpolate_bilinear(x, factor, *, block_planes=None, row_block=None):
    """Bilinear resize of (N, C, H, W) by `factor` (PyTorch semantics).

    `block_planes` / `row_block` override the automatically chosen plane batch
    / output-row tile (used for testing and tuning).
    """
    if x.ndim != 4:
        raise ValueError(f"expected NCHW input, got shape {x.shape}")
    N, C, H, W = map(int, x.shape)
    OH = int(math.floor(H * factor))
    OW = int(math.floor(W * factor))
    if OH <= 0 or OW <= 0:
        raise ValueError(f"factor={factor} yields an empty output ({OH}, {OW})")
    nc = N * C

    # bf16 inputs stay bf16 into the MXU (f32 accumulate); f32 keeps f32 parity.
    cd = jnp.bfloat16 if x.dtype == jnp.bfloat16 else jnp.float32
    wy = _linear_weights(H, OH, factor).astype(cd)          # (OH, H)
    wx = _linear_weights(W, OW, factor).T.astype(cd)        # (W, OW)

    x_isz = jnp.dtype(x.dtype).itemsize
    o_isz = x_isz
    c_isz = jnp.dtype(cd).itemsize

    cap = _vmem_capacity_bytes()
    vmem_limit = max(32 * _MIB, min(int(0.72 * cap), 100 * _MIB))
    budget = vmem_limit - 4 * _MIB

    def fp(b, toh):
        return _block_vmem_bytes(b, toh, H, W, OW, x_isz, o_isz, c_isz)

    two_cores = _tensorcores_per_device() == 2
    sub_o = _sublane(o_isz)

    if row_block is not None:
        # ---- forced output-row-tiled mode (testing / tuning) ----------------
        toh = int(row_block)
        if OH % toh:
            raise ValueError("row_block must divide the output height")
        b, plane_steps, nc_pad = 1, nc, nc
        row_steps = OH // toh
    elif block_planes is not None or fp(1, OH) <= budget:
        # ---- plane-batched mode: whole planes, `b` of them per grid step ----
        toh, row_steps = OH, 1
        if block_planes is not None:
            b = max(1, min(int(block_planes), nc))
            plane_steps = -(-nc // b)
            nc_pad = plane_steps * b
        else:
            lo, hi = 1, nc                      # largest b that fits the budget
            while lo < hi:
                mid = (lo + hi + 1) // 2
                if fp(mid, OH) <= budget:
                    lo = mid
                else:
                    hi = mid - 1
            align = _plane_align(H, OH, o_isz)
            b, plane_steps, nc_pad = _choose_plane_block(nc, lo, align, two_cores)
    else:
        # ---- row-tiled mode: one plane per step, tile the OUTPUT rows -------
        # The full source plane stays resident (fetched once per plane since
        # the inner grid axis revisits the same input block); only the output
        # rows, Wy rows and intermediates are tiled.
        b, plane_steps, nc_pad = 1, nc, nc
        toh = OH
        for cand in range(sub_o, OH, sub_o):
            if OH % cand == 0 and fp(1, cand) <= budget:
                toh = cand                      # keep the largest fitting divisor
        # TODO(synk): if even the smallest aligned row tile does not fit (or OH
        # has no aligned divisor), source-row halo windowing would be needed;
        # we fall back to whole-plane blocks with a raised VMEM limit instead.
        row_steps = OH // toh

    # Raise the scoped-VMEM limit to cover the chosen block (<= ~90% physical).
    vmem_limit = min(int(0.9 * cap), max(vmem_limit, fp(b, toh) + 4 * _MIB))

    x2 = x.reshape(nc * H, W)                         # free row-major reshape
    if nc_pad != nc:                                  # ragged N*C: pad planes
        x2 = jnp.pad(x2, ((0, (nc_pad - nc) * H), (0, 0)))

    out2 = pl.pallas_call(
        _interp_kernel,
        out_shape=jax.ShapeDtypeStruct((nc_pad * OH, OW), x.dtype),
        grid_spec=pltpu.PrefetchScalarGridSpec(
            num_scalar_prefetch=0,
            grid=(plane_steps, row_steps),
            in_specs=[
                pl.BlockSpec((toh, H), lambda i, j: (j, 0)),     # Wy row tile
                pl.BlockSpec((W, OW), lambda i, j: (0, 0)),      # Wx (whole)
                pl.BlockSpec((b * H, W), lambda i, j: (i, 0)),   # b source planes
            ],
            out_specs=pl.BlockSpec((b * toh, OW),
                                   lambda i, j: (i * row_steps + j, 0)),
            scratch_shapes=[pltpu.VMEM((b * toh, W), cd)],
        ),
        compiler_params=pltpu.CompilerParams(
            dimension_semantics=("parallel", "arbitrary"),
            vmem_limit_bytes=int(vmem_limit),
        ),
    )(wy, wx, x2)

    return out2[: nc * OH].reshape(N, C, OH, OW)


def interpolate(x, factor, prefilter=0):
    """Forward pass of sumie.transforms.Interpolate."""
    if prefilter:
        # TODO(synk): prefilter path (repeated 11x11 stride-1 AvgPool2d) is not
        # implemented; it is dead code for the module's default prefilter=0.
        raise NotImplementedError("prefilter != 0 is not supported")
    # The torch forward's unused `m = F.interpolate(x, scale_factor=0.1)` has
    # no effect on the output and is intentionally skipped.
    return interpolate_bilinear(x, factor)


# ---------------------------------------------------------------------------
# Independent gather-based reference (same PyTorch semantics)
# ---------------------------------------------------------------------------
def _reference_bilinear(x, factor):
    N, C, H, W = x.shape
    OH = int(math.floor(H * factor))
    OW = int(math.floor(W * factor))

    def axis_taps(in_size, out_size):
        src = jnp.maximum(
            (jnp.arange(out_size, dtype=jnp.float32) + 0.5) / float(factor) - 0.5,
            0.0)
        i0 = jnp.clip(jnp.floor(src).astype(jnp.int32), 0, in_size - 1)
        i1 = jnp.minimum(i0 + 1, in_size - 1)
        frac = src - i0.astype(jnp.float32)
        return i0, i1, frac

    y0, y1, fy = axis_taps(H, OH)
    x0, x1, fx = axis_taps(W, OW)

    top = x[:, :, y0, :]
    bot = x[:, :, y1, :]
    top = top[:, :, :, x0] * (1.0 - fx) + top[:, :, :, x1] * fx
    bot = bot[:, :, :, x0] * (1.0 - fx) + bot[:, :, :, x1] * fx
    return top * (1.0 - fy)[:, None] + bot * fy[:, None]


if __name__ == "__main__":
    key = jax.random.PRNGKey(0)
    factor = 2

    # 1) default auto-tiled path
    x = jax.random.normal(key, (2, 4, 16, 16), dtype=jnp.float32)
    y = interpolate(x, factor)
    jax.block_until_ready(y)
    ref = _reference_bilinear(x, factor)
    assert y.shape == (2, 4, 32, 32), y.shape
    assert jnp.allclose(y, ref, atol=3e-5, rtol=3e-5)

    # 2) multi-step grid + ragged plane count (padding path)
    x2 = jax.random.normal(jax.random.PRNGKey(1), (1, 5, 16, 16), jnp.float32)
    y2 = interpolate_bilinear(x2, factor, block_planes=2)
    jax.block_until_ready(y2)
    assert y2.shape == (1, 5, 32, 32), y2.shape
    assert jnp.allclose(y2, _reference_bilinear(x2, factor), atol=3e-5, rtol=3e-5)

    # 3) output-row-tiled path (used automatically for large planes)
    y3 = interpolate_bilinear(x, factor, row_block=8)
    jax.block_until_ready(y3)
    assert jnp.allclose(y3, ref, atol=3e-5, rtol=3e-5)

    # 4) bf16 inputs take the bf16-MXU path
    xb = x.astype(jnp.bfloat16)
    yb = interpolate(xb, factor)
    jax.block_until_ready(yb)
    assert yb.dtype == jnp.bfloat16
    assert jnp.allclose(yb.astype(jnp.float32), ref, atol=0.1)

    print("KERNEL_OK")
</pallas_src>

<mosaic_0001>
module attributes {stable_mosaic.version = 11 : i64} {
  func.func @_interp_kernel(%arg0: i32, %arg1: i32, %arg2: memref<32x16xf32, #tpu.memory_space<vmem>>, %arg3: memref<16x32xf32, #tpu.memory_space<vmem>>, %arg4: memref<128x16xf32, #tpu.memory_space<vmem>>, %arg5: memref<256x32xf32, #tpu.memory_space<vmem>>, %arg6: memref<256x16xf32, #tpu.memory_space<vmem>>) attributes {dimension_semantics = [#tpu.dimension_semantics<parallel>, #tpu.dimension_semantics<arbitrary>], iteration_bounds = array<i64: 1, 1>, scalar_prefetch = 0 : i64, scratch_operands = 1 : i64, tpu.core_type = #tpu.core_type<tc>, window_params = [{transform_indices = @transform_0, window_bounds = array<i64: 32, 16>}, {pipeline_mode = #tpu.pipeline_mode<synchronous>, transform_indices = @transform_1, window_bounds = array<i64: 16, 32>}, {transform_indices = @transform_2, window_bounds = array<i64: 128, 16>}, {transform_indices = @transform_3, window_bounds = array<i64: 256, 32>}]} {
    %c0 = arith.constant 0 : index
    %c0_0 = arith.constant 0 : index
    %0 = vector.load %arg2[%c0, %c0_0] : memref<32x16xf32, #tpu.memory_space<vmem>>, vector<32x16xf32>
    %c0_1 = arith.constant 0 : index
    %c0_2 = arith.constant 0 : index
    %1 = vector.load %arg4[%c0_1, %c0_2] : memref<128x16xf32, #tpu.memory_space<vmem>>, vector<16x16xf32>
    %cst = arith.constant dense<0.000000e+00> : vector<32x16xf32>
    %2 = tpu.matmul %0, %1, %cst {dimension_numbers = #tpu.dot_dimension_numbers<[1], [0], [0], [1], [0, 0, 1, 1], [], []>} : vector<32x16xf32>, vector<16x16xf32>, vector<32x16xf32> -> vector<32x16xf32>
    %c0_3 = arith.constant 0 : index
    %c0_4 = arith.constant 0 : index
    %3 = vector.load %arg6[%c0_3, %c0_4] : memref<256x16xf32, #tpu.memory_space<vmem>>, vector<32x16xf32>
    tpu.vector_store %arg6[%c0_3, %c0_4], %2 {strides = array<i32>} : memref<256x16xf32, #tpu.memory_space<vmem>>, vector<32x16xf32>,
    %c16 = arith.constant 16 : index
    %c0_5 = arith.constant 0 : index
    %4 = vector.load %arg4[%c16, %c0_5] : memref<128x16xf32, #tpu.memory_space<vmem>>, vector<16x16xf32>
    %cst_6 = arith.constant dense<0.000000e+00> : vector<32x16xf32>
    %5 = tpu.matmul %0, %4, %cst_6 {dimension_numbers = #tpu.dot_dimension_numbers<[1], [0], [0], [1], [0, 0, 1, 1], [], []>} : vector<32x16xf32>, vector<16x16xf32>, vector<32x16xf32> -> vector<32x16xf32>
    %c32 = arith.constant 32 : index
    %c0_7 = arith.constant 0 : index
    %6 = vector.load %arg6[%c32, %c0_7] : memref<256x16xf32, #tpu.memory_space<vmem>>, vector<32x16xf32>
    tpu.vector_store %arg6[%c32, %c0_7], %5 {strides = array<i32>} : memref<256x16xf32, #tpu.memory_space<vmem>>, vector<32x16xf32>,
    %c32_8 = arith.constant 32 : index
    %c0_9 = arith.constant 0 : index
    %7 = vector.load %arg4[%c32_8, %c0_9] : memref<128x16xf32, #tpu.memory_space<vmem>>, vector<16x16xf32>
    %cst_10 = arith.constant dense<0.000000e+00> : vector<32x16xf32>
    %8 = tpu.matmul %0, %7, %cst_10 {dimension_numbers = #tpu.dot_dimension_numbers<[1], [0], [0], [1], [0, 0, 1, 1], [], []>} : vector<32x16xf32>, vector<16x16xf32>, vector<32x16xf32> -> vector<32x16xf32>
    %c64 = arith.constant 64 : index
    %c0_11 = arith.constant 0 : index
    %9 = vector.load %arg6[%c64, %c0_11] : memref<256x16xf32, #tpu.memory_space<vmem>>, vector<32x16xf32>
    tpu.vector_store %arg6[%c64, %c0_11], %8 {strides = array<i32>} : memref<256x16xf32, #tpu.memory_space<vmem>>, vector<32x16xf32>,
    %c48 = arith.constant 48 : index
    %c0_12 = arith.constant 0 : index
    %10 = vector.load %arg4[%c48, %c0_12] : memref<128x16xf32, #tpu.memory_space<vmem>>, vector<16x16xf32>
    %cst_13 = arith.constant dense<0.000000e+00> : vector<32x16xf32>
    %11 = tpu.matmul %0, %10, %cst_13 {dimension_numbers = #tpu.dot_dimension_numbers<[1], [0], [0], [1], [0, 0, 1, 1], [], []>} : vector<32x16xf32>, vector<16x16xf32>, vector<32x16xf32> -> vector<32x16xf32>
    %c96 = arith.constant 96 : index
    %c0_14 = arith.constant 0 : index
    %12 = vector.load %arg6[%c96, %c0_14] : memref<256x16xf32, #tpu.memory_space<vmem>>, vector<32x16xf32>
    tpu.vector_store %arg6[%c96, %c0_14], %11 {strides = array<i32>} : memref<256x16xf32, #tpu.memory_space<vmem>>, vector<32x16xf32>,
    %c64_15 = arith.constant 64 : index
    %c0_16 = arith.constant 0 : index
    %13 = vector.load %arg4[%c64_15, %c0_16] : memref<128x16xf32, #tpu.memory_space<vmem>>, vector<16x16xf32>
    %cst_17 = arith.constant dense<0.000000e+00> : vector<32x16xf32>
    %14 = tpu.matmul %0, %13, %cst_17 {dimension_numbers = #tpu.dot_dimension_numbers<[1], [0], [0], [1], [0, 0, 1, 1], [], []>} : vector<32x16xf32>, vector<16x16xf32>, vector<32x16xf32> -> vector<32x16xf32>
    %c128 = arith.constant 128 : index
    %c0_18 = arith.constant 0 : index
    %15 = vector.load %arg6[%c128, %c0_18] : memref<256x16xf32, #tpu.memory_space<vmem>>, vector<32x16xf32>
    tpu.vector_store %arg6[%c128, %c0_18], %14 {strides = array<i32>} : memref<256x16xf32, #tpu.memory_space<vmem>>, vector<32x16xf32>,
    %c80 = arith.constant 80 : index
    %c0_19 = arith.constant 0 : index
    %16 = vector.load %arg4[%c80, %c0_19] : memref<128x16xf32, #tpu.memory_space<vmem>>, vector<16x16xf32>
    %cst_20 = arith.constant dense<0.000000e+00> : vector<32x16xf32>
    %17 = tpu.matmul %0, %16, %cst_20 {dimension_numbers = #tpu.dot_dimension_numbers<[1], [0], [0], [1], [0, 0, 1, 1], [], []>} : vector<32x16xf32>, vector<16x16xf32>, vector<32x16xf32> -> vector<32x16xf32>
    %c160 = arith.constant 160 : index
    %c0_21 = arith.constant 0 : index
    %18 = vector.load %arg6[%c160, %c0_21] : memref<256x16xf32, #tpu.memory_space<vmem>>, vector<32x16xf32>
    tpu.vector_store %arg6[%c160, %c0_21], %17 {strides = array<i32>} : memref<256x16xf32, #tpu.memory_space<vmem>>, vector<32x16xf32>,
    %c96_22 = arith.constant 96 : index
    %c0_23 = arith.constant 0 : index
    %19 = vector.load %arg4[%c96_22, %c0_23] : memref<128x16xf32, #tpu.memory_space<vmem>>, vector<16x16xf32>
    %cst_24 = arith.constant dense<0.000000e+00> : vector<32x16xf32>
    %20 = tpu.matmul %0, %19, %cst_24 {dimension_numbers = #tpu.dot_dimension_numbers<[1], [0], [0], [1], [0, 0, 1, 1], [], []>} : vector<32x16xf32>, vector<16x16xf32>, vector<32x16xf32> -> vector<32x16xf32>
    %c192 = arith.constant 192 : index
    %c0_25 = arith.constant 0 : index
    %21 = vector.load %arg6[%c192, %c0_25] : memref<256x16xf32, #tpu.memory_space<vmem>>, vector<32x16xf32>
    tpu.vector_store %arg6[%c192, %c0_25], %20 {strides = array<i32>} : memref<256x16xf32, #tpu.memory_space<vmem>>, vector<32x16xf32>,
    %c112 = arith.constant 112 : index
    %c0_26 = arith.constant 0 : index
    %22 = vector.load %arg4[%c112, %c0_26] : memref<128x16xf32, #tpu.memory_space<vmem>>, vector<16x16xf32>
    %cst_27 = arith.constant dense<0.000000e+00> : vector<32x16xf32>
    %23 = tpu.matmul %0, %22, %cst_27 {dimension_numbers = #tpu.dot_dimension_numbers<[1], [0], [0], [1], [0, 0, 1, 1], [], []>} : vector<32x16xf32>, vector<16x16xf32>, vector<32x16xf32> -> vector<32x16xf32>
    %c224 = arith.constant 224 : index
    %c0_28 = arith.constant 0 : index
    %24 = vector.load %arg6[%c224, %c0_28] : memref<256x16xf32, #tpu.memory_space<vmem>>, vector<32x16xf32>
    tpu.vector_store %arg6[%c224, %c0_28], %23 {strides = array<i32>} : memref<256x16xf32, #tpu.memory_space<vmem>>, vector<32x16xf32>,
    %c0_29 = arith.constant 0 : index
    %c0_30 = arith.constant 0 : index
    %25 = vector.load %arg6[%c0_29, %c0_30] : memref<256x16xf32, #tpu.memory_space<vmem>>, vector<256x16xf32>
    %c0_31 = arith.constant 0 : index
    %c0_32 = arith.constant 0 : index
    %26 = vector.load %arg3[%c0_31, %c0_32] : memref<16x32xf32, #tpu.memory_space<vmem>>, vector<16x32xf32>
    %cst_33 = arith.constant dense<0.000000e+00> : vector<256x32xf32>
    %27 = tpu.matmul %25, %26, %cst_33 {dimension_numbers = #tpu.dot_dimension_numbers<[1], [0], [0], [1], [0, 0, 1, 1], [], []>} : vector<256x16xf32>, vector<16x32xf32>, vector<256x32xf32> -> vector<256x32xf32>
    %c0_34 = arith.constant 0 : index
    %c0_35 = arith.constant 0 : index
    %28 = vector.load %arg5[%c0_34, %c0_35] : memref<256x32xf32, #tpu.memory_space<vmem>>, vector<256x32xf32>
    tpu.vector_store %arg5[%c0_34, %c0_35], %27 {strides = array<i32>} : memref<256x32xf32, #tpu.memory_space<vmem>>, vector<256x32xf32>,
    return
  }
  func.func @transform_0(%arg0: i32, %arg1: i32) -> (i32, i32) {
    %c0_i32 = arith.constant 0 : i32
    %c0_i32_0 = arith.constant 0 : i32
    return %arg1, %c0_i32 : i32, i32
  }
  func.func @transform_1(%arg0: i32, %arg1: i32) -> (i32, i32) {
    %c0_i32 = arith.constant 0 : i32
    %c0_i32_0 = arith.constant 0 : i32
    %c0_i32_1 = arith.constant 0 : i32
    return %c0_i32, %c0_i32_0 : i32, i32
  }
  func.func @transform_2(%arg0: i32, %arg1: i32) -> (i32, i32) {
    %c0_i32 = arith.constant 0 : i32
    %c0_i32_0 = arith.constant 0 : i32
    return %arg0, %c0_i32 : i32, i32
  }
  func.func @transform_3(%arg0: i32, %arg1: i32) -> (i32, i32) {
    %c1_i32 = arith.constant 1 : i32
    %0 = arith.muli %arg0, %c1_i32 : i32
    %1 = arith.addi %0, %arg1 : i32
    %c0_i32 = arith.constant 0 : i32
    %c0_i32_0 = arith.constant 0 : i32
    return %1, %c0_i32 : i32, i32
  }
}

</mosaic_0001>

<bundles_post_ra>
// kernel: tpu_custom_call.1
= control target key start
LH: loop header
LB: loop body
LE: loop exit
PB: predicated region body
PF: predicated region fallthrough
CT: control target
= control target key end

     0   :  { %vm34_vm0 = vcmask 130048   ;;  %vm1128_vm1 = vcmask 261120   ;;  %s1823_s2 = inlined_call_operand.vmem [shape: f32[128,16], index: 2, kind: input, shape index: {}]   ;;  %s1824_s0 = inlined_call_operand.vmem [shape: f32[32,16], index: 0, kind: input, shape index: {}]   ;;  %s1825_s1 = inlined_call_operand.vmem [shape: f32[16,32], index: 1, kind: input, shape index: {}]   ;;  %s1826_s3 = inlined_call_operand.vmem [shape: f32[256,32], index: 3, kind: output, shape index: {}]  }
   0x1   :  { %v32_v0 = vld [vmem:[%s1823_s2] sm:$0xff]  ;;  %v33_v1 = vld [vmem:[%s1823_s2 + $0x8] sm:$0xff]  ;;  %v136_v7 = vld [vmem:[%s1823_s2 + $0x10] sm:$0xff] }
   0x2   :  { %v1532_v2 = vld [vmem:[%s1824_s0] sm:$0xff]  ;;  %v1465_v3 = vpack.c.bf16 %v33_v1, %v32_v0  ;;  %v228_v5 = vld [vmem:[%s1823_s2 + $0x28] sm:$0xff]  ;;  %v137_v8 = vld [vmem:[%s1823_s2 + $0x18] sm:$0xff] }
   0x3   :  { %1337 = vmatprep.mubr.msk.f32.mxu0 %vm34_vm0, %v1532_v2  ;;  %v227_v4 = vld [vmem:[%s1823_s2 + $0x20] sm:$0xff]  ;;  %1347 = vmatprep.mubr.msk.f32.mxu1 %vm34_vm0, %v1532_v2  ;;  %v318_v9 = vld [vmem:[%s1823_s2 + $0x30] sm:$0xff]  ;;  %v319_v10 = vld [vmem:[%s1823_s2 + $0x38] sm:$0xff]  ;;  %v1469_v12 = vpack.c.bf16 %v137_v8, %v136_v7 }
   0x4   :  { %v1473_v6 = vpack.c.bf16 %v228_v5, %v227_v4  ;;  %1466 = vmatprep.subr.bf16.mxu0 %v1465_v3  ;;  %v29_v11 = vld [vmem:[%s1824_s0 + $0x8] sm:$0xff]  ;;  %v409_v13 = vld [vmem:[%s1823_s2 + $0x40] sm:$0xff]  ;;  %v30_v15 = vld [vmem:[%s1824_s0 + $0x10] sm:$0xff]  ;;  %v1477_v16 = vpack.c.bf16 %v319_v10, %v318_v9 }
   0x5   :  { %1468 = vmatpush3.bf16.msra.mxu0 %v1465_v3  ;;  %v410_v14 = vld [vmem:[%s1823_s2 + $0x48] sm:$0xff]  ;;  %1470 = vmatprep.subr.bf16.mxu1 %v1469_v12  ;;  %v500_v18 = vld [vmem:[%s1823_s2 + $0x50] sm:$0xff]  ;;  %v501_v19 = vld [vmem:[%s1823_s2 + $0x58] sm:$0xff] }
   0x6   :  { %1474 = vmatprep.subr.bf16.mxu0 %v1473_v6  ;;  %v1481_v17 = vpack.c.bf16 %v410_v14, %v409_v13  ;;  %1472 = vmatpush3.bf16.msra.mxu1 %v1469_v12  ;;  %v31_v20 = vld [vmem:[%s1824_s0 + $0x18] sm:$0xff]  ;;  %v1485_v21 = vpack.c.bf16 %v501_v19, %v500_v18  ;;  %v591_v22 = vld [vmem:[%s1823_s2 + $0x60] sm:$0xff]  ;;  %v592_v23 = vld [vmem:[%s1823_s2 + $0x68] sm:$0xff] }
   0x7   :  { %1478 = vmatprep.subr.bf16.mxu1 %v1477_v16  ;;  %v1489_v24 = vpack.c.bf16 %v592_v23, %v591_v22  ;;  %v682_v25 = vld [vmem:[%s1823_s2 + $0x70] sm:$0xff]  ;;  %v683_v26 = vld [vmem:[%s1823_s2 + $0x78] sm:$0xff]  ;;  %v805_v28 = vld [vmem:[%s1825_s1] sm:$0xff] }
   0x8   :  { %1338 = vmatmul.mubr.msk.f32.vlgmr.msra.gmra.mrb[0].mxu0 %vm34_vm0, %v29_v11  ;;  %v1493_v27 = vpack.c.bf16 %v683_v26, %v682_v25  ;;  %v806_v29 = vld [vmem:[%s1825_s1 + $0x8] sm:$0xff] }
   0x9   :  { %1476 = vmatpush3.bf16.msra.mxu0 %v1473_v6  ;;  %1340 = vmatprep.mubr.msk.f32.mxu0 %vm34_vm0, %v30_v15  ;;  %v1497_v30 = vpack.c.bf16 %v806_v29, %v805_v28 }
   0xa   :  { %1482 = vmatprep.subr.bf16.mxu0 %v1481_v17  ;;  %1348 = vmatmul.mubr.msk.f32.vlgmr.msra.gmra.mrb[0].mxu1 %vm34_vm0, %v29_v11 }
   0xb   :  { %1480 = vmatpush3.bf16.msra.mxu1 %v1477_v16  ;;  %1350 = vmatprep.mubr.msk.f32.mxu1 %vm34_vm0, %v30_v15 }
   0xc   :  { %1341 = vmatmul.mubr.msk.f32.gmra.mrb[2].mxu0 %vm34_vm0, %v31_v20  ;;  %1486 = vmatprep.subr.bf16.mxu1 %v1485_v21 }
   0xd   :  { %1357 = vmatprep.mubr.msk.f32.mxu0 %vm34_vm0, %v1532_v2 }
   0xe   :  { %1351 = vmatmul.mubr.msk.f32.gmra.mrb[2].mxu1 %vm34_vm0, %v31_v20 }
   0xf   :  { %1367 = vmatprep.mubr.msk.f32.mxu1 %vm34_vm0, %v1532_v2 }
  0x10   :  { %1358 = vmatmul.mubr.msk.f32.vlgmr.msra.gmra.mrb[4].mxu0 %vm34_vm0, %v29_v11 }
  0x11   :  { %1484 = vmatpush3.bf16.msra.mxu0 %v1481_v17  ;;  %1360 = vmatprep.mubr.msk.f32.mxu0 %vm34_vm0, %v30_v15 }
  0x12   :  { %1490 = vmatprep.subr.bf16.mxu0 %v1489_v24  ;;  %1368 = vmatmul.mubr.msk.f32.vlgmr.msra.gmra.mrb[4].mxu1 %vm34_vm0, %v29_v11 }
  0x13   :  { %1488 = vmatpush3.bf16.msra.mxu1 %v1485_v21  ;;  %1370 = vmatprep.mubr.msk.f32.mxu1 %vm34_vm0, %v30_v15 }
  0x14   :  { %1361 = vmatmul.mubr.msk.f32.gmra.mrb[6].mxu0 %vm34_vm0, %v31_v20  ;;  %1494 = vmatprep.subr.bf16.mxu1 %v1493_v27 }
  0x15   :  { %1377 = vmatprep.mubr.msk.f32.mxu0 %vm34_vm0, %v1532_v2 }
  0x16   :  { %1371 = vmatmul.mubr.msk.f32.gmra.mrb[6].mxu1 %vm34_vm0, %v31_v20 }
  0x17   :  { %1387 = vmatprep.mubr.msk.f32.mxu1 %vm34_vm0, %v1532_v2 }
  0x18   :  { %1378 = vmatmul.mubr.msk.f32.vlgmr.msra.gmra.mrb[8].mxu0 %vm34_vm0, %v29_v11 }
  0x19   :  { %1380 = vmatprep.mubr.msk.f32.mxu0 %vm34_vm0, %v30_v15  ;;  %1492 = vmatpush3.bf16.msra.mxu0 %v1489_v24 }
  0x1a   :  { %1388 = vmatmul.mubr.msk.f32.vlgmr.msra.gmra.mrb[8].mxu1 %vm34_vm0, %v29_v11  ;;  %1498 = vmatprep.subr.bf16.mxu0 %v1497_v30 }
  0x1b   :  { %1390 = vmatprep.mubr.msk.f32.mxu1 %vm34_vm0, %v30_v15  ;;  %1496 = vmatpush3.bf16.msra.mxu1 %v1493_v27 }
  0x1c   :  { %1381 = vmatmul.mubr.msk.f32.gmra.mrb[10].mxu0 %vm34_vm0, %v31_v20  ;;  %1501 = vmatprep.subr.bf16.mxu1 %v1497_v30 }
  0x1d   :  { %1397 = vmatprep.mubr.msk.f32.mxu0 %vm34_vm0, %v1532_v2 }
  0x1e   :  { %1391 = vmatmul.mubr.msk.f32.gmra.mrb[10].mxu1 %vm34_vm0, %v31_v20 }
  0x1f   :  { %1407 = vmatprep.mubr.msk.f32.mxu1 %vm34_vm0, %v1532_v2 }
  0x20   :  { %1398 = vmatmul.mubr.msk.f32.vlgmr.msra.gmra.mrb[12].mxu0 %vm34_vm0, %v29_v11 }
  0x21   :  { %1400 = vmatprep.mubr.msk.f32.mxu0 %vm34_vm0, %v30_v15  ;;  %1500 = vmatpush3.bf16.msra.mxu0 %v1497_v30 }
  0x22   :  { %1408 = vmatmul.mubr.msk.f32.vlgmr.msra.gmra.mrb[12].mxu1 %vm34_vm0, %v29_v11 }
  0x23   :  { %1410 = vmatprep.mubr.msk.f32.mxu1 %vm34_vm0, %v30_v15  ;;  %1502 = vmatpush3.bf16.msra.mxu1 %v1497_v30 }
  0x24   :  { %1401 = vmatmul.mubr.msk.f32.gmra.mrb[14].mxu0 %vm34_vm0, %v31_v20 }
  0x26   :  { %1411 = vmatmul.mubr.msk.f32.gmra.mrb[14].mxu1 %vm34_vm0, %v31_v20 }
  0xdb   :  { %v1339_v31 = vpop.f32.mrb[0].mxu0 }
  0xdc   :  { %133 = vst.msk [vmem:[#allocation2 + $0x8] sm:$0xff] %vm34_vm0, %v1339_v31  ;;  %v113_v32 = vpop.f32.mrb[1].mxu0 }
  0xdd   :  { %132 = vst.msk [vmem:[#allocation2] sm:$0xff] %vm34_vm0, %v113_v32  ;;  %v1349_v33 = vpop.f32.mrb[0].mxu1 }
  0xde   :  { %224 = vst.msk [vmem:[#allocation2 + $0x28] sm:$0xff] %vm34_vm0, %v1349_v33  ;;  %v204_v35 = vpop.f32.mrb[1].mxu1 }
  0xdf   :  { %v1342_v34 = vpop.f32.mrb[2].mxu0  ;;  %223 = vst.msk [vmem:[#allocation2 + $0x20] sm:$0xff] %vm34_vm0, %v204_v35 }
  0xe0   :  { %135 = vst.msk [vmem:[#allocation2 + $0x18] sm:$0xff] %vm34_vm0, %v1342_v34  ;;  %v123_v36 = vpop.f32.mrb[3].mxu0 }
  0xe1   :  { %134 = vst.msk [vmem:[#allocation2 + $0x10] sm:$0xff] %vm34_vm0, %v123_v36  ;;  %v1352_v37 = vpop.f32.mrb[2].mxu1 }
  0xe2   :  { %226 = vst.msk [vmem:[#allocation2 + $0x38] sm:$0xff] %vm34_vm0, %v1352_v37  ;;  %v214_v39 = vpop.f32.mrb[3].mxu1 }
  0xe3   :  { %v1359_v38 = vpop.f32.mrb[4].mxu0  ;;  %225 = vst.msk [vmem:[#allocation2 + $0x30] sm:$0xff] %vm34_vm0, %v214_v39  ;;  %v774_v42 = vld [vmem:[#allocation2 + $0x8] sm:$0xff] }
  0xe4   :  { %315 = vst.msk [vmem:[#allocation2 + $0x48] sm:$0xff] %vm34_vm0, %v1359_v38  ;;  %v295_v40 = vpop.f32.mrb[5].mxu0  ;;  %v773_v41 = vld [vmem:[#allocation2] sm:$0xff] }
  0xe5   :  { %314 = vst.msk [vmem:[#allocation2 + $0x40] sm:$0xff] %vm34_vm0, %v295_v40  ;;  %1417 = vmatprep.mubr.msk.f32.mxu0 %vm34_vm0, %v773_v41  ;;  %v1369_v43 = vpop.f32.mrb[4].mxu1  ;;  %v778_v55 = vld [vmem:[#allocation2 + $0x28] sm:$0xff] }
  0xe6   :  { %1418 = vmatmul.mubr.msk.f32.vlgmr.msra.gmra.mrb[16].mxu0 %vm34_vm0, %v774_v42  ;;  %406 = vst.msk [vmem:[#allocation2 + $0x68] sm:$0xff] %vm34_vm0, %v1369_v43  ;;  %v386_v45 = vpop.f32.mrb[5].mxu1  ;;  %v777_v48 = vld [vmem:[#allocation2 + $0x20] sm:$0xff] }
  0xe7   :  { %v1362_v44 = vpop.f32.mrb[6].mxu0  ;;  %405 = vst.msk [vmem:[#allocation2 + $0x60] sm:$0xff] %vm34_vm0, %v386_v45  ;;  %v776_v49 = vld [vmem:[#allocation2 + $0x18] sm:$0xff] }
  0xe8   :  { %317 = vst.msk [vmem:[#allocation2 + $0x58] sm:$0xff] %vm34_vm0, %v1362_v44  ;;  %v305_v46 = vpop.f32.mrb[7].mxu0  ;;  %v775_v47 = vld [vmem:[#allocation2 + $0x10] sm:$0xff] }
  0xe9   :  { %316 = vst.msk [vmem:[#allocation2 + $0x50] sm:$0xff] %vm34_vm0, %v305_v46  ;;  %1420 = vmatprep.mubr.msk.f32.mxu0 %vm34_vm0, %v775_v47  ;;  %v1372_v50 = vpop.f32.mrb[6].mxu1  ;;  %v780_v60 = vld [vmem:[#allocation2 + $0x38] sm:$0xff] }
  0xea   :  { %1421 = vmatmul.mubr.msk.f32.gmra.mrb[18].mxu0 %vm34_vm0, %v776_v49  ;;  %408 = vst.msk [vmem:[#allocation2 + $0x78] sm:$0xff] %vm34_vm0, %v1372_v50  ;;  %v396_v52 = vpop.f32.mrb[7].mxu1  ;;  %v779_v54 = vld [vmem:[#allocation2 + $0x30] sm:$0xff] }
  0xeb   :  { %v1379_v51 = vpop.f32.mrb[8].mxu0  ;;  %1423 = vmatprep.mubr.msk.f32.mxu0 %vm34_vm0, %v777_v48  ;;  %407 = vst.msk [vmem:[#allocation2 + $0x70] sm:$0xff] %vm34_vm0, %v396_v52  ;;  %v782_v3 = vld [vmem:[#allocation2 + $0x48] sm:$0xff] }
  0xec   :  { %497 = vst.msk [vmem:[#allocation2 + $0x88] sm:$0xff] %vm34_vm0, %v1379_v51  ;;  %v477_v53 = vpop.f32.mrb[9].mxu0  ;;  %v781_v61 = vld [vmem:[#allocation2 + $0x40] sm:$0xff] }
  0xed   :  { %496 = vst.msk [vmem:[#allocation2 + $0x80] sm:$0xff] %vm34_vm0, %v477_v53  ;;  %v1389_v56 = vpop.f32.mrb[8].mxu1  ;;  %v786_v18 = vld [vmem:[#allocation2 + $0x68] sm:$0xff] }
  0xee   :  { %1424 = vmatmul.mubr.msk.f32.gmra.mrb[20].mxu0 %vm34_vm0, %v778_v55  ;;  %588 = vst.msk [vmem:[#allocation2 + $0xa8] sm:$0xff] %vm34_vm0, %v1389_v56  ;;  %v568_v58 = vpop.f32.mrb[9].mxu1  ;;  %v785_v14 = vld [vmem:[#allocation2 + $0x60] sm:$0xff] }
  0xef   :  { %v1382_v57 = vpop.f32.mrb[10].mxu0  ;;  %1426 = vmatprep.mubr.msk.f32.mxu0 %vm34_vm0, %v779_v54  ;;  %587 = vst.msk [vmem:[#allocation2 + $0xa0] sm:$0xff] %vm34_vm0, %v568_v58  ;;  %v784_v12 = vld [vmem:[#allocation2 + $0x58] sm:$0xff] }
  0xf0   :  { %499 = vst.msk [vmem:[#allocation2 + $0x98] sm:$0xff] %vm34_vm0, %v1382_v57  ;;  %v487_v59 = vpop.f32.mrb[11].mxu0  ;;  %v783_v5 = vld [vmem:[#allocation2 + $0x50] sm:$0xff] }
  0xf1   :  { %498 = vst.msk [vmem:[#allocation2 + $0x90] sm:$0xff] %vm34_vm0, %v487_v59  ;;  %v1392_v62 = vpop.f32.mrb[10].mxu1  ;;  %v788_v22 = vld [vmem:[#allocation2 + $0x78] sm:$0xff] }
  0xf2   :  { %1427 = vmatmul.mubr.msk.f32.gmra.mrb[22].mxu0 %vm34_vm0, %v780_v60  ;;  %590 = vst.msk [vmem:[#allocation2 + $0xb8] sm:$0xff] %vm34_vm0, %v1392_v62  ;;  %v578_v63 = vpop.f32.mrb[11].mxu1  ;;  %v787_v20 = vld [vmem:[#allocation2 + $0x70] sm:$0xff] }
  0xf3   :  { %1429 = vmatprep.mubr.msk.f32.mxu0 %vm34_vm0, %v781_v61  ;;  %v1399_v0 = vpop.f32.mrb[12].mxu0  ;;  %589 = vst.msk [vmem:[#allocation2 + $0xb0] sm:$0xff] %vm34_vm0, %v578_v63  ;;  %v790_v4 = vld [vmem:[#allocation2 + $0x88] sm:$0xff] }
  0xf4   :  { %v789_v1 = vld [vmem:[#allocation2 + $0x80] sm:$0xff]  ;;  %679 = vst.msk [vmem:[#allocation2 + $0xc8] sm:$0xff] %vm34_vm0, %v1399_v0  ;;  %v659_v2 = vpop.f32.mrb[13].mxu0 }
  0xf5   :  { %1441 = vmatprep.mubr.msk.f32.mxu1 %vm34_vm0, %v789_v1  ;;  %678 = vst.msk [vmem:[#allocation2 + $0xc0] sm:$0xff] %vm34_vm0, %v659_v2  ;;  %v1409_v6 = vpop.f32.mrb[12].mxu1  ;;  %v794_v19 = vld [vmem:[#allocation2 + $0xa8] sm:$0xff] }
  0xf6   :  { %1430 = vmatmul.mubr.msk.f32.gmra.mrb[24].mxu0 %vm34_vm0, %v782_v3  ;;  %1442 = vmatmul.mubr.msk.f32.vlgmr.msra.gmra.mrb[16].mxu1 %vm34_vm0, %v790_v4  ;;  %770 = vst.msk [vmem:[#allocation2 + $0xe8] sm:$0xff] %vm34_vm0, %v1409_v6  ;;  %v750_v8 = vpop.f32.mrb[13].mxu1  ;;  %v793_v10 = vld [vmem:[#allocation2 + $0xa0] sm:$0xff] }
  0xf7   :  { %1432 = vmatprep.mubr.msk.f32.mxu0 %vm34_vm0, %v783_v5  ;;  %v1402_v7 = vpop.f32.mrb[14].mxu0  ;;  %769 = vst.msk [vmem:[#allocation2 + $0xe0] sm:$0xff] %vm34_vm0, %v750_v8  ;;  %v792_v13 = vld [vmem:[#allocation2 + $0x98] sm:$0xff] }
  0xf8   :  { %v791_v9 = vld [vmem:[#allocation2 + $0x90] sm:$0xff]  ;;  %681 = vst.msk [vmem:[#allocation2 + $0xd8] sm:$0xff] %vm34_vm0, %v1402_v7  ;;  %v669_v11 = vpop.f32.mrb[15].mxu0 }
  0xf9   :  { %1444 = vmatprep.mubr.msk.f32.mxu1 %vm34_vm0, %v791_v9  ;;  %680 = vst.msk [vmem:[#allocation2 + $0xd0] sm:$0xff] %vm34_vm0, %v669_v11  ;;  %v1412_v15 = vpop.f32.mrb[14].mxu1  ;;  %v796_v23 = vld [vmem:[#allocation2 + $0xb8] sm:$0xff] }
  0xfa   :  { %1433 = vmatmul.mubr.msk.f32.gmra.mrb[26].mxu0 %vm34_vm0, %v784_v12  ;;  %1445 = vmatmul.mubr.msk.f32.gmra.mrb[18].mxu1 %vm34_vm0, %v792_v13  ;;  %772 = vst.msk [vmem:[#allocation2 + $0xf8] sm:$0xff] %vm34_vm0, %v1412_v15  ;;  %v760_v16 = vpop.f32.mrb[15].mxu1  ;;  %v795_v17 = vld [vmem:[#allocation2 + $0xb0] sm:$0xff] }
  0xfb   :  { %1435 = vmatprep.mubr.msk.f32.mxu0 %vm34_vm0, %v785_v14  ;;  %1447 = vmatprep.mubr.msk.f32.mxu1 %vm34_vm0, %v793_v10  ;;  %771 = vst.msk [vmem:[#allocation2 + $0xf0] sm:$0xff] %vm34_vm0, %v760_v16  ;;  %v798_v25 = vld [vmem:[#allocation2 + $0xc8] sm:$0xff] }
  0xfc   :  { %v797_v21 = vld [vmem:[#allocation2 + $0xc0] sm:$0xff] }
  0xfd   :  { %v802_v29 = vld [vmem:[#allocation2 + $0xe8] sm:$0xff] }
  0xfe   :  { %1436 = vmatmul.mubr.msk.f32.gmra.mrb[28].mxu0 %vm34_vm0, %v786_v18  ;;  %1448 = vmatmul.mubr.msk.f32.gmra.mrb[20].mxu1 %vm34_vm0, %v794_v19  ;;  %v801_v26 = vld [vmem:[#allocation2 + $0xe0] sm:$0xff] }
  0xff   :  { %1438 = vmatprep.mubr.msk.f32.mxu0 %vm34_vm0, %v787_v20  ;;  %1450 = vmatprep.mubr.msk.f32.mxu1 %vm34_vm0, %v795_v17  ;;  %v800_v27 = vld [vmem:[#allocation2 + $0xd8] sm:$0xff] }
 0x100   :  { %v799_v24 = vld [vmem:[#allocation2 + $0xd0] sm:$0xff] }
 0x101   :  { %v804_v30 = vld [vmem:[#allocation2 + $0xf8] sm:$0xff] }
 0x102   :  { %1439 = vmatmul.mubr.msk.f32.gmra.mrb[30].mxu0 %vm34_vm0, %v788_v22  ;;  %1451 = vmatmul.mubr.msk.f32.gmra.mrb[22].mxu1 %vm34_vm0, %v796_v23  ;;  %v803_v28 = vld [vmem:[#allocation2 + $0xf0] sm:$0xff] }
 0x103   :  { %1453 = vmatprep.mubr.msk.f32.mxu1 %vm34_vm0, %v797_v21 }
 0x106   :  { %1454 = vmatmul.mubr.msk.f32.gmra.mrb[24].mxu1 %vm34_vm0, %v798_v25 }
 0x107   :  { %1456 = vmatprep.mubr.msk.f32.mxu1 %vm34_vm0, %v799_v24 }
 0x10a   :  { %1457 = vmatmul.mubr.msk.f32.gmra.mrb[26].mxu1 %vm34_vm0, %v800_v27 }
 0x10b   :  { %1459 = vmatprep.mubr.msk.f32.mxu1 %vm34_vm0, %v801_v26 }
 0x10e   :  { %1460 = vmatmul.mubr.msk.f32.gmra.mrb[28].mxu1 %vm34_vm0, %v802_v29 }
 0x10f   :  { %1462 = vmatprep.mubr.msk.f32.mxu1 %vm34_vm0, %v803_v28 }
 0x112   :  { %1463 = vmatmul.mubr.msk.f32.gmra.mrb[30].mxu1 %vm34_vm0, %v804_v30 }
 0x1b9   :  { %v1419_v31 = vpop.f32.mrb[16].mxu0 }
 0x1ba   :  { %1130 = vst.msk [vmem:[%s1826_s3 + $0x8] sm:$0xff] %vm1128_vm1, %v1419_v31  ;;  %v969_v32 = vpop.f32.mrb[17].mxu0 }
 0x1bb   :  { %1129 = vst.msk [vmem:[%s1826_s3] sm:$0xff] %vm1128_vm1, %v969_v32 }
 0x1bd   :  { %v1422_v33 = vpop.f32.mrb[18].mxu0 }
 0x1be   :  { %1132 = vst.msk [vmem:[%s1826_s3 + $0x18] sm:$0xff] %vm1128_vm1, %v1422_v33  ;;  %v979_v34 = vpop.f32.mrb[19].mxu0 }
 0x1bf   :  { %1131 = vst.msk [vmem:[%s1826_s3 + $0x10] sm:$0xff] %vm1128_vm1, %v979_v34 }
 0x1c1   :  { %v1425_v35 = vpop.f32.mrb[20].mxu0 }
 0x1c2   :  { %1134 = vst.msk [vmem:[%s1826_s3 + $0x28] sm:$0xff] %vm1128_vm1, %v1425_v35  ;;  %v989_v36 = vpop.f32.mrb[21].mxu0 }
 0x1c3   :  { %1133 = vst.msk [vmem:[%s1826_s3 + $0x20] sm:$0xff] %vm1128_vm1, %v989_v36 }
 0x1c5   :  { %v1428_v37 = vpop.f32.mrb[22].mxu0 }
 0x1c6   :  { %1136 = vst.msk [vmem:[%s1826_s3 + $0x38] sm:$0xff] %vm1128_vm1, %v1428_v37  ;;  %v999_v38 = vpop.f32.mrb[23].mxu0 }
 0x1c7   :  { %1135 = vst.msk [vmem:[%s1826_s3 + $0x30] sm:$0xff] %vm1128_vm1, %v999_v38 }
 0x1c9   :  { %v1431_v39 = vpop.f32.mrb[24].mxu0  ;;  %v1443_v40 = vpop.f32.mrb[16].mxu1 }
 0x1ca   :  { %1138 = vst.msk [vmem:[%s1826_s3 + $0x48] sm:$0xff] %vm1128_vm1, %v1431_v39  ;;  %1146 = vst.msk [vmem:[%s1826_s3 + $0x88] sm:$0xff] %vm1128_vm1, %v1443_v40  ;;  %v1009_v41 = vpop.f32.mrb[25].mxu0  ;;  %v1049_v42 = vpop.f32.mrb[17].mxu1 }
 0x1cb   :  { %1137 = vst.msk [vmem:[%s1826_s3 + $0x40] sm:$0xff] %vm1128_vm1, %v1009_v41  ;;  %1145 = vst.msk [vmem:[%s1826_s3 + $0x80] sm:$0xff] %vm1128_vm1, %v1049_v42 }
 0x1cd   :  { %v1434_v43 = vpop.f32.mrb[26].mxu0  ;;  %v1446_v44 = vpop.f32.mrb[18].mxu1 }
 0x1ce   :  { %1140 = vst.msk [vmem:[%s1826_s3 + $0x58] sm:$0xff] %vm1128_vm1, %v1434_v43  ;;  %1148 = vst.msk [vmem:[%s1826_s3 + $0x98] sm:$0xff] %vm1128_vm1, %v1446_v44  ;;  %v1019_v45 = vpop.f32.mrb[27].mxu0  ;;  %v1059_v46 = vpop.f32.mrb[19].mxu1 }
 0x1cf   :  { %1139 = vst.msk [vmem:[%s1826_s3 + $0x50] sm:$0xff] %vm1128_vm1, %v1019_v45  ;;  %1147 = vst.msk [vmem:[%s1826_s3 + $0x90] sm:$0xff] %vm1128_vm1, %v1059_v46 }
 0x1d1   :  { %v1437_v47 = vpop.f32.mrb[28].mxu0  ;;  %v1449_v48 = vpop.f32.mrb[20].mxu1 }
 0x1d2   :  { %1142 = vst.msk [vmem:[%s1826_s3 + $0x68] sm:$0xff] %vm1128_vm1, %v1437_v47  ;;  %1150 = vst.msk [vmem:[%s1826_s3 + $0xa8] sm:$0xff] %vm1128_vm1, %v1449_v48  ;;  %v1029_v49 = vpop.f32.mrb[29].mxu0  ;;  %v1069_v50 = vpop.f32.mrb[21].mxu1 }
 0x1d3   :  { %1141 = vst.msk [vmem:[%s1826_s3 + $0x60] sm:$0xff] %vm1128_vm1, %v1029_v49  ;;  %1149 = vst.msk [vmem:[%s1826_s3 + $0xa0] sm:$0xff] %vm1128_vm1, %v1069_v50 }
 0x1d5   :  { %v1440_v51 = vpop.f32.mrb[30].mxu0  ;;  %v1452_v52 = vpop.f32.mrb[22].mxu1 }
 0x1d6   :  { %1144 = vst.msk [vmem:[%s1826_s3 + $0x78] sm:$0xff] %vm1128_vm1, %v1440_v51  ;;  %1152 = vst.msk [vmem:[%s1826_s3 + $0xb8] sm:$0xff] %vm1128_vm1, %v1452_v52  ;;  %v1039_v53 = vpop.f32.mrb[31].mxu0  ;;  %v1079_v54 = vpop.f32.mrb[23].mxu1 }
 0x1d7   :  { %1143 = vst.msk [vmem:[%s1826_s3 + $0x70] sm:$0xff] %vm1128_vm1, %v1039_v53  ;;  %1151 = vst.msk [vmem:[%s1826_s3 + $0xb0] sm:$0xff] %vm1128_vm1, %v1079_v54 }
 0x1d9   :  { %v1455_v55 = vpop.f32.mrb[24].mxu1 }
 0x1da   :  { %1154 = vst.msk [vmem:[%s1826_s3 + $0xc8] sm:$0xff] %vm1128_vm1, %v1455_v55  ;;  %v1089_v56 = vpop.f32.mrb[25].mxu1 }
 0x1db   :  { %1153 = vst.msk [vmem:[%s1826_s3 + $0xc0] sm:$0xff] %vm1128_vm1, %v1089_v56 }
 0x1dd   :  { %v1458_v57 = vpop.f32.mrb[26].mxu1 }
 0x1de   :  { %1156 = vst.msk [vmem:[%s1826_s3 + $0xd8] sm:$0xff] %vm1128_vm1, %v1458_v57  ;;  %v1099_v58 = vpop.f32.mrb[27].mxu1 }
 0x1df   :  { %1155 = vst.msk [vmem:[%s1826_s3 + $0xd0] sm:$0xff] %vm1128_vm1, %v1099_v58 }
 0x1e1   :  { %v1461_v59 = vpop.f32.mrb[28].mxu1 }
 0x1e2   :  { %1158 = vst.msk [vmem:[%s1826_s3 + $0xe8] sm:$0xff] %vm1128_vm1, %v1461_v59  ;;  %v1109_v60 = vpop.f32.mrb[29].mxu1 }
 0x1e3   :  { %1157 = vst.msk [vmem:[%s1826_s3 + $0xe0] sm:$0xff] %vm1128_vm1, %v1109_v60 }
 0x1e5   :  { %v1464_v61 = vpop.f32.mrb[30].mxu1 }
 0x1e6   :  { %1160 = vst.msk [vmem:[%s1826_s3 + $0xf8] sm:$0xff] %vm1128_vm1, %v1464_v61  ;;  %v1119_v62 = vpop.f32.mrb[31].mxu1 }
 0x1e7   :  { %1159 = vst.msk [vmem:[%s1826_s3 + $0xf0] sm:$0xff] %vm1128_vm1, %v1119_v62 }

</bundles_post_ra>
